<compile_context>
chip_gen: v7x
topology: tpu7x:2x2x1
jax: 0.10.0
libtpu: 0.0.40
codegen_flags: <defaults>
</compile_context>

<pallas_src>
import jax
import jax.numpy as jnp
from jax.experimental import pallas as pl
from jax.experimental.pallas import tpu as pltpu


def _rnn_seq_kernel(cx_ref, h0_ref, w1_cx_ref, w1_h_ref, b1_ref,
                    w2_ref, b2_ref, logp_ref, hidden_out_ref):
    """One grid step == one RNN time step. Weights & outputs stay VMEM-resident."""
    t = pl.program_id(0)
    H = hidden_out_ref.shape[1]

    # Seed the recurrent state (resident output block) from the initial hidden.
    @pl.when(t == 0)
    def _():
        hidden_out_ref[...] = h0_ref[...]

    cx = cx_ref[0]                 # (B, C+I)  this step's [category | input]
    h = hidden_out_ref[...]        # (B, H)    recurrent state

    # Fused first layer: [hidden_new | i2o_out] = [cx | h] @ [w_i2h | w_i2o] + b
    f1 = (jnp.dot(cx, w1_cx_ref[...], preferred_element_type=jnp.float32)
          + jnp.dot(h, w1_h_ref[...], preferred_element_type=jnp.float32)
          + b1_ref[...])           # (B, H+O), lane order matches o2o's input

    # o2o(cat(hidden_new, i2o_out)) == f1 @ w_o2o + b_o2o
    out = jnp.dot(f1, w2_ref[...], preferred_element_type=jnp.float32) + b2_ref[...]

    # Dropout(p=0) is the identity.  LogSoftmax(dim=1), numerically stable (f32).
    m = jnp.max(out, axis=1, keepdims=True)
    lse = jnp.log(jnp.sum(jnp.exp(out - m), axis=1, keepdims=True)) + m
    logp_ref[t] = out - lse        # accumulate into resident (T, B, O) slab

    hidden_out_ref[...] = f1[:, :H]   # carry hidden_new to the next step


@jax.jit
def rnn_forward_seq(category, x, hidden0, params):
    """Run the char-RNN over a whole sequence in one pallas_call.

    category: (T, B, C) per-step category vectors
    x:        (T, B, I) per-step inputs
    hidden0:  (B, H)    initial hidden state
    Returns (log_probs (T, B, O), final_hidden (B, H)).
    """
    T, B, _ = x.shape
    CI = category.shape[-1] + x.shape[-1]
    H = params["w1_h"].shape[0]
    O = params["w2"].shape[1]

    cx = jnp.concatenate((category, x), axis=-1)   # (T, B, C+I)

    def const2d(shape):
        return pl.BlockSpec(shape, lambda t: (0, 0))

    return pl.pallas_call(
        _rnn_seq_kernel,
        grid=(T,),
        in_specs=[
            pl.BlockSpec((1, B, CI), lambda t: (t, 0, 0)),   # streamed per step
            const2d((B, H)),                                 # hidden0 (resident)
            const2d(params["w1_cx"].shape),                  # fused weights /
            const2d(params["w1_h"].shape),                   # biases: constant
            const2d(params["b1"].shape),                     # index_map => DMA'd
            const2d(params["w2"].shape),                     # once, VMEM-resident
            const2d(params["b2"].shape),
        ],
        out_specs=(
            pl.BlockSpec((T, B, O), lambda t: (0, 0, 0)),    # one dense writeback
            pl.BlockSpec((B, H), lambda t: (0, 0)),          # resident hidden
        ),
        out_shape=(
            jax.ShapeDtypeStruct((T, B, O), jnp.float32),
            jax.ShapeDtypeStruct((B, H), jnp.float32),
        ),
        compiler_params=pltpu.CompilerParams(
            dimension_semantics=("arbitrary",)),             # time recurrence
    )(cx, hidden0, params["w1_cx"], params["w1_h"], params["b1"],
      params["w2"], params["b2"])


def rnn_forward(category, x, hidden, params):
    """Single-step forward matching the PyTorch module: returns (log_probs, hidden)."""
    logp, h = rnn_forward_seq(category[None], x[None], hidden, params)
    return logp[0], h


def init_params(key, n_categories, input_size, hidden_size, output_size):
    """PyTorch-style Linear init; weights pre-transposed, pre-fused, pre-split."""
    def linear(key, fan_in, fan_out):
        k_w, k_b = jax.random.split(key)
        bound = 1.0 / jnp.sqrt(fan_in)
        # stored as (fan_in, fan_out) == W.T
        w = jax.random.uniform(k_w, (fan_in, fan_out), jnp.float32, -bound, bound)
        b = jax.random.uniform(k_b, (1, fan_out), jnp.float32, -bound, bound)
        return w, b

    k1, k2, k3 = jax.random.split(key, 3)
    cih = n_categories + input_size + hidden_size
    ci = n_categories + input_size

    w_i2h, b_i2h = linear(k1, cih, hidden_size)
    w_i2o, b_i2o = linear(k2, cih, output_size)
    w_o2o, b_o2o = linear(k3, hidden_size + output_size, output_size)

    # Fuse i2h | i2o along the output axis so one dot yields [hidden | out] in
    # exactly the lane order o2o consumes; split rows into (cat,x) vs hidden
    # because the hidden activation lives inside the kernel.
    w1 = jnp.concatenate((w_i2h, w_i2o), axis=1)   # (C+I+H, H+O)
    b1 = jnp.concatenate((b_i2h, b_i2o), axis=1)   # (1, H+O)
    return {
        "w1_cx": w1[:ci],      # (C+I, H+O)
        "w1_h": w1[ci:],       # (H,   H+O)
        "b1": b1,
        "w2": w_o2o,           # (H+O, O)
        "b2": b_o2o,           # (1, O)
    }


def rnn_step_ref(category, x, hidden, params):
    """Pure-JAX single-step reference mirroring the PyTorch module."""
    ic = jnp.concatenate((category, x, hidden), axis=1)
    w1 = jnp.concatenate((params["w1_cx"], params["w1_h"]), axis=0)
    f1 = ic @ w1 + params["b1"]                      # = [i2h(ic) | i2o(ic)]
    H = params["w1_h"].shape[0]
    h_new = f1[:, :H]
    out = f1 @ params["w2"] + params["b2"]           # o2o(cat(hidden, output))
    return jax.nn.log_softmax(out, axis=1), h_new    # dropout(p=0) is identity


def rnn_seq_ref(category, x, hidden0, params):
    logps, h = [], hidden0
    for t in range(x.shape[0]):
        lp, h = rnn_step_ref(category[t], x[t], h, params)
        logps.append(lp)
    return jnp.stack(logps), h


if __name__ == "__main__":
    # Small shapes consistent with the module's forward pass.
    # NOTE: the original script has n_categories = len(all_categories) = 0 at
    # import time; in actual use categories are populated, so we pick 4.
    B, N_CAT, IN, HID, OUT, T = 2, 4, 8, 32, 8, 8

    key = jax.random.PRNGKey(0)
    k_cat, k_x, k_p = jax.random.split(key, 3)

    category = jax.random.normal(k_cat, (T, B, N_CAT), jnp.float32)
    x = jax.random.normal(k_x, (T, B, IN), jnp.float32)
    hidden0 = jnp.zeros((B, HID), jnp.float32)   # initHidden()

    params = init_params(k_p, N_CAT, IN, HID, OUT)

    # Sequence-resident kernel (main path).
    log_probs, final_hidden = rnn_forward_seq(category, x, hidden0, params)
    jax.block_until_ready((log_probs, final_hidden))

    # Single-step API mirroring the module's forward().
    lp1, h1 = rnn_forward(category[0], x[0], hidden0, params)
    jax.block_until_ready((lp1, h1))

    ref_lp, ref_h = rnn_seq_ref(category, x, hidden0, params)
    assert jnp.allclose(log_probs, ref_lp, atol=1e-5, rtol=1e-5)
    assert jnp.allclose(final_hidden, ref_h, atol=1e-5, rtol=1e-5)

    ref_lp1, ref_h1 = rnn_step_ref(category[0], x[0], hidden0, params)
    assert jnp.allclose(lp1, ref_lp1, atol=1e-5, rtol=1e-5)
    assert jnp.allclose(h1, ref_h1, atol=1e-5, rtol=1e-5)

    print("KERNEL_OK")
</pallas_src>

<mosaic_0001>
module attributes {stable_mosaic.version = 11 : i64} {
  func.func @_rnn_seq_kernel(%arg0: i32, %arg1: memref<1x2x12xf32, #tpu.memory_space<vmem>>, %arg2: memref<2x32xf32, #tpu.memory_space<vmem>>, %arg3: memref<12x40xf32, #tpu.memory_space<vmem>>, %arg4: memref<32x40xf32, #tpu.memory_space<vmem>>, %arg5: memref<1x40xf32, #tpu.memory_space<vmem>>, %arg6: memref<40x8xf32, #tpu.memory_space<vmem>>, %arg7: memref<1x8xf32, #tpu.memory_space<vmem>>, %arg8: memref<8x2x8xf32, #tpu.memory_space<vmem>>, %arg9: memref<2x32xf32, #tpu.memory_space<vmem>>) attributes {dimension_semantics = [#tpu.dimension_semantics<arbitrary>], iteration_bounds = array<i64: 8>, scalar_prefetch = 0 : i64, scratch_operands = 0 : i64, tpu.core_type = #tpu.core_type<tc>, window_params = [{transform_indices = @transform_0, window_bounds = array<i64: 1, 2, 12>}, {pipeline_mode = #tpu.pipeline_mode<synchronous>, transform_indices = @transform_1, window_bounds = array<i64: 2, 32>}, {pipeline_mode = #tpu.pipeline_mode<synchronous>, transform_indices = @transform_2, window_bounds = array<i64: 12, 40>}, {pipeline_mode = #tpu.pipeline_mode<synchronous>, transform_indices = @transform_3, window_bounds = array<i64: 32, 40>}, {pipeline_mode = #tpu.pipeline_mode<synchronous>, transform_indices = @transform_4, window_bounds = array<i64: 1, 40>}, {pipeline_mode = #tpu.pipeline_mode<synchronous>, transform_indices = @transform_5, window_bounds = array<i64: 40, 8>}, {pipeline_mode = #tpu.pipeline_mode<synchronous>, transform_indices = @transform_6, window_bounds = array<i64: 1, 8>}, {pipeline_mode = #tpu.pipeline_mode<synchronous>, transform_indices = @transform_7, window_bounds = array<i64: 8, 2, 8>}, {pipeline_mode = #tpu.pipeline_mode<synchronous>, transform_indices = @transform_8, window_bounds = array<i64: 2, 32>}]} {
    %c0_i32 = arith.constant 0 : i32
    %0 = arith.cmpi eq, %arg0, %c0_i32 : i32
    %1 = arith.extui %0 : i1 to i32
    %c0_i32_0 = arith.constant 0 : i32
    %2 = arith.cmpi ne, %1, %c0_i32_0 : i32
    scf.if %2 {
      %c0_23 = arith.constant 0 : index
      %c0_24 = arith.constant 0 : index
      %36 = vector.load %arg2[%c0_23, %c0_24] : memref<2x32xf32, #tpu.memory_space<vmem>>, vector<2x32xf32>
      %c0_25 = arith.constant 0 : index
      %c0_26 = arith.constant 0 : index
      %37 = vector.load %arg9[%c0_25, %c0_26] : memref<2x32xf32, #tpu.memory_space<vmem>>, vector<2x32xf32>
      tpu.vector_store %arg9[%c0_25, %c0_26], %36 {strides = array<i32>} : memref<2x32xf32, #tpu.memory_space<vmem>>, vector<2x32xf32>,
    } else {
    }
    %c0 = arith.constant 0 : index
    %c0_1 = arith.constant 0 : index
    %c0_2 = arith.constant 0 : index
    %3 = vector.load %arg1[%c0, %c0_1, %c0_2] : memref<1x2x12xf32, #tpu.memory_space<vmem>>, vector<1x2x12xf32>
    %4 = vector.shape_cast %3 : vector<1x2x12xf32> to vector<2x12xf32>
    %c0_3 = arith.constant 0 : index
    %c0_4 = arith.constant 0 : index
    %5 = vector.load %arg9[%c0_3, %c0_4] : memref<2x32xf32, #tpu.memory_space<vmem>>, vector<2x32xf32>
    %c0_5 = arith.constant 0 : index
    %c0_6 = arith.constant 0 : index
    %6 = vector.load %arg3[%c0_5, %c0_6] : memref<12x40xf32, #tpu.memory_space<vmem>>, vector<12x40xf32>
    %cst = arith.constant dense<0.000000e+00> : vector<2x40xf32>
    %7 = tpu.matmul %4, %6, %cst {dimension_numbers = #tpu.dot_dimension_numbers<[1], [0], [0], [1], [0, 0, 1, 1], [], []>} : vector<2x12xf32>, vector<12x40xf32>, vector<2x40xf32> -> vector<2x40xf32>
    %c0_7 = arith.constant 0 : index
    %c0_8 = arith.constant 0 : index
    %8 = vector.load %arg4[%c0_7, %c0_8] : memref<32x40xf32, #tpu.memory_space<vmem>>, vector<32x40xf32>
    %cst_9 = arith.constant dense<0.000000e+00> : vector<2x40xf32>
    %9 = tpu.matmul %5, %8, %cst_9 {dimension_numbers = #tpu.dot_dimension_numbers<[1], [0], [0], [1], [0, 0, 1, 1], [], []>} : vector<2x32xf32>, vector<32x40xf32>, vector<2x40xf32> -> vector<2x40xf32>
    %10 = arith.addf %7, %9 : vector<2x40xf32>
    %c0_10 = arith.constant 0 : index
    %c0_11 = arith.constant 0 : index
    %11 = vector.load %arg5[%c0_10, %c0_11] : memref<1x40xf32, #tpu.memory_space<vmem>>, vector<1x40xf32>
    %12 = vector.broadcast %11 : vector<1x40xf32> to vector<2x40xf32>
    %13 = arith.addf %10, %12 : vector<2x40xf32>
    %c0_12 = arith.constant 0 : index
    %c0_13 = arith.constant 0 : index
    %14 = vector.load %arg6[%c0_12, %c0_13] : memref<40x8xf32, #tpu.memory_space<vmem>>, vector<40x8xf32>
    %cst_14 = arith.constant dense<0.000000e+00> : vector<2x8xf32>
    %15 = tpu.matmul %13, %14, %cst_14 {dimension_numbers = #tpu.dot_dimension_numbers<[1], [0], [0], [1], [0, 0, 1, 1], [], []>} : vector<2x40xf32>, vector<40x8xf32>, vector<2x8xf32> -> vector<2x8xf32>
    %c0_15 = arith.constant 0 : index
    %c0_16 = arith.constant 0 : index
    %16 = vector.load %arg7[%c0_15, %c0_16] : memref<1x8xf32, #tpu.memory_space<vmem>>, vector<1x8xf32>
    %17 = vector.broadcast %16 : vector<1x8xf32> to vector<2x8xf32>
    %18 = arith.addf %15, %17 : vector<2x8xf32>
    %cst_17 = arith.constant dense<0xFF800000> : vector<2xf32>
    %19 = vector.multi_reduction <maximumf>, %18, %cst_17 [1] : vector<2x8xf32> to vector<2xf32>
    %20 = vector.shape_cast %19 : vector<2xf32> to vector<2x1xf32>
    %21 = vector.broadcast %20 : vector<2x1xf32> to vector<2x8xf32>
    %22 = arith.subf %18, %21 : vector<2x8xf32>
    %23 = math.exp %22 : vector<2x8xf32>
    %cst_18 = arith.constant dense<0.000000e+00> : vector<2xf32>
    %24 = vector.multi_reduction <add>, %23, %cst_18 [1] : vector<2x8xf32> to vector<2xf32>
    %25 = vector.shape_cast %24 : vector<2xf32> to vector<2x1xf32>
    %26 = math.log %25 : vector<2x1xf32>
    %27 = arith.addf %26, %20 : vector<2x1xf32>
    %28 = vector.broadcast %27 : vector<2x1xf32> to vector<2x8xf32>
    %29 = arith.subf %18, %28 : vector<2x8xf32>
    %30 = arith.index_cast %arg0 : i32 to index
    %c0_19 = arith.constant 0 : index
    %c0_20 = arith.constant 0 : index
    %31 = vector.load %arg8[%30, %c0_19, %c0_20] : memref<8x2x8xf32, #tpu.memory_space<vmem>>, vector<1x2x8xf32>
    %32 = vector.shape_cast %31 : vector<1x2x8xf32> to vector<2x8xf32>
    %33 = vector.shape_cast %29 : vector<2x8xf32> to vector<1x2x8xf32>
    tpu.vector_store %arg8[%30, %c0_19, %c0_20], %33 {strides = array<i32>} : memref<8x2x8xf32, #tpu.memory_space<vmem>>, vector<1x2x8xf32>,
    %34 = vector.extract_strided_slice %13 {offsets = [0, 0], sizes = [2, 32], strides = [1, 1]} : vector<2x40xf32> to vector<2x32xf32>
    %c0_21 = arith.constant 0 : index
    %c0_22 = arith.constant 0 : index
    %35 = vector.load %arg9[%c0_21, %c0_22] : memref<2x32xf32, #tpu.memory_space<vmem>>, vector<2x32xf32>
    tpu.vector_store %arg9[%c0_21, %c0_22], %34 {strides = array<i32>} : memref<2x32xf32, #tpu.memory_space<vmem>>, vector<2x32xf32>,
    return
  }
  func.func @transform_0(%arg0: i32) -> (i32, i32, i32) {
    %c0_i32 = arith.constant 0 : i32
    %c0_i32_0 = arith.constant 0 : i32
    %c0_i32_1 = arith.constant 0 : i32
    return %arg0, %c0_i32, %c0_i32_0 : i32, i32, i32
  }
  func.func @transform_1(%arg0: i32) -> (i32, i32) {
    %c0_i32 = arith.constant 0 : i32
    %c0_i32_0 = arith.constant 0 : i32
    %c0_i32_1 = arith.constant 0 : i32
    return %c0_i32, %c0_i32_0 : i32, i32
  }
  func.func @transform_2(%arg0: i32) -> (i32, i32) {
    %c0_i32 = arith.constant 0 : i32
    %c0_i32_0 = arith.constant 0 : i32
    %c0_i32_1 = arith.constant 0 : i32
    return %c0_i32, %c0_i32_0 : i32, i32
  }
  func.func @transform_3(%arg0: i32) -> (i32, i32) {
    %c0_i32 = arith.constant 0 : i32
    %c0_i32_0 = arith.constant 0 : i32
    %c0_i32_1 = arith.constant 0 : i32
    return %c0_i32, %c0_i32_0 : i32, i32
  }
  func.func @transform_4(%arg0: i32) -> (i32, i32) {
    %c0_i32 = arith.constant 0 : i32
    %c0_i32_0 = arith.constant 0 : i32
    %c0_i32_1 = arith.constant 0 : i32
    return %c0_i32, %c0_i32_0 : i32, i32
  }
  func.func @transform_5(%arg0: i32) -> (i32, i32) {
    %c0_i32 = arith.constant 0 : i32
    %c0_i32_0 = arith.constant 0 : i32
    %c0_i32_1 = arith.constant 0 : i32
    return %c0_i32, %c0_i32_0 : i32, i32
  }
  func.func @transform_6(%arg0: i32) -> (i32, i32) {
    %c0_i32 = arith.constant 0 : i32
    %c0_i32_0 = arith.constant 0 : i32
    %c0_i32_1 = arith.constant 0 : i32
    return %c0_i32, %c0_i32_0 : i32, i32
  }
  func.func @transform_7(%arg0: i32) -> (i32, i32, i32) {
    %c0_i32 = arith.constant 0 : i32
    %c0_i32_0 = arith.constant 0 : i32
    %c0_i32_1 = arith.constant 0 : i32
    %c0_i32_2 = arith.constant 0 : i32
    return %c0_i32, %c0_i32_0, %c0_i32_1 : i32, i32, i32
  }
  func.func @transform_8(%arg0: i32) -> (i32, i32) {
    %c0_i32 = arith.constant 0 : i32
    %c0_i32_0 = arith.constant 0 : i32
    %c0_i32_1 = arith.constant 0 : i32
    return %c0_i32, %c0_i32_0 : i32, i32
  }
}

</mosaic_0001>

<bundles_post_ra>
// kernel: rnn_forward_seq.1
= control target key start
LH: loop header
LB: loop body
LE: loop exit
PB: predicated region body
PF: predicated region fallthrough
CT: control target
= control target key end

     0   :  { %14 = vsyncpa [#allocation3], 0  ;;  %s989_s0 = inlined_call_operand.vmem [shape: f32[8,2,12], index: 0, kind: input, shape index: {}]   ;;  %s990_s1 = inlined_call_operand.vmem [shape: f32[2,32], index: 1, kind: input, shape index: {}]   ;;  %s991_s2 = inlined_call_operand.vmem [shape: f32[12,40], index: 2, kind: input, shape index: {}]   ;;  %s992_s3 = inlined_call_operand.vmem [shape: f32[32,40], index: 3, kind: input, shape index: {}]   ;;  %s993_s4 = inlined_call_operand.vmem [shape: f32[1,40], index: 4, kind: input, shape index: {}]   ;;  %s994_s5 = inlined_call_operand.vmem [shape: f32[40,8], index: 5, kind: input, shape index: {}]   ;;  %s995_s6 = inlined_call_operand.vmem [shape: f32[1,8], index: 6, kind: input, shape index: {}]   ;;  %s996_s7 = inlined_call_operand.hbm [shape: f32[8,2,8], index: 7, kind: output, shape index: {0}]   ;;  %s997_s8 = inlined_call_operand.hbm [shape: f32[2,32], index: 8, kind: output, shape index: {1}]  }
   0x1   :  { %15 = vsyncpa [#allocation5], 0  ;;  %s873_s27 = smov 0  }
   0x2 LB: > { %s879_s28 = sadd.s32 4294967295, %s818_s27   ;;  %p643_p0 = scmp.ge.s32.totalorder %s818_s27, 1  ;;  %s818_s27 = sphi %s873_s27, %s21_s27  }
   0x3   : > { %p256_p1 = scmp.lt.s32.totalorder %s818_s27, 9 }
   0x5   : > { %p257_p2 = pnand %p643_p0, %p256_p1 }
   0x6   : > { %p284_p3 = scmp.lt.s32.totalorder (!%p257_p2), %s879_s28, 7  ;;  %p645_p4 = scmp.ne.s32.totalorder (!%p257_p2), %s879_s28, 0 }
   0x7   : > { %260 = sbr.rel (%p257_p2) target bundleno = 802 (0x322), region = 48 }
   0xe   : > { %s285_s29 = scalar_select %p284_p3, %s879_s28, 7 }
   0xf   : > { %291 = sbr.rel (%p645_p4) target bundleno = 22 (0x16), region = 52  ;;  %v292_v0 = vld [vmem:[%s990_s1] sm:$0x3] (!%p645_p4)  ;;  %vm293_vm0 = vcmask (!%p645_p4), 254976  }
  0x10   : > { %s644_s30 = sshll.u32 %s285_s29, 1  ;;  %294 = vst.msk [vmem:[#allocation4] sm:$0x3] (!%p645_p4), %vm293_vm0, %v292_v0 }
  0x11   : > { %s888_s11 = scalar_lea.vmem %s989_s0, %s644_s30 }
  0x16 PF: > { %v299_v1 = vld [vmem:[%s992_s3] sm:$0xff]  ;;  %v300_v2 = vld [vmem:[%s992_s3 + $0x8] sm:$0xff]  ;;  %v301_v3 = vld [vmem:[%s992_s3 + $0x10] sm:$0xff]  ;;  %v820_v4 = vmov 0.0|0.0   ;;  %vm821_vm1 = vmmov 0   ;;  %v822_v7 = vmov 0.0  }
  0x17   : > { %704 = vmatprep.subr.bf16.mxu0 %v820_v4  ;;  %v705_v5 = vpack.c.bf16 %v300_v2, %v299_v1  ;;  %v302_v6 = vld [vmem:[%s992_s3 + $0x18] sm:$0xff]  ;;  %681 = vmatprep.mubr.msk.f32.mxu0 %vm821_vm1, %v822_v7  ;;  %v297_v9 = vld [vmem:[%s991_s2] sm:$0xff]  ;;  %v298_v10 = vld [vmem:[%s991_s2 + $0x8] sm:$0xf]  ;;  %vm381_vm2 = vcmask 1043456   ;;  %vm303_vm3 = vcmask 261120  }
  0x18   : > { %714 = vmatprep.subr.bf16.mxu1 %v820_v4  ;;  %701 = vmatprep.mubr.msk.f32.mxu1 %vm821_vm1, %v822_v7  ;;  %v708_v8 = vpack.c.bf16 %v302_v6, %v301_v3  ;;  %v296_v11 = vld [vmem:[#allocation4] sm:$0x3]  ;;  %v711_v12 = vpack.c.bf16 %v298_v10, %v297_v9  ;;  %vm823_vm4 = vmmov 1   ;;  %v295_v13 = vld [vmem:[%s888_s11] sm:$0x3]  ;;  %vm377_vm6 = vcmask 97280  }
  0x19   : > { %706 = vmatpush3.bf16.msra.mxu0 %v705_v5  ;;  %vm712_vm5 = vmpackc.low %vm381_vm2, %vm823_vm4  ;;  %v463_v14 = vld [vmem:[%s994_s5] sm:$0xff]  ;;  %v464_v15 = vld [vmem:[%s994_s5 + $0x8] sm:$0xff]  ;;  %vm475_vm7 = vcmask 326656   ;;  %vm566_vm8 = vcmask 254976   ;;  %vm549_vm9 = vcmask 58368   ;;  %p728_p5 = scmp.eq.s32.totalorder %s879_s28, 7 }
  0x1a   : > { %707 = vmatprep.subr.bf16.mxu0 %v820_v4  ;;  %v715_v16 = vpack.c.bf16 %v464_v15, %v463_v14  ;;  %v465_v17 = vld [vmem:[%s994_s5 + $0x10] sm:$0xff]  ;;  %v466_v18 = vld [vmem:[%s994_s5 + $0x18] sm:$0xff]  ;;  %v467_v20 = vld [vmem:[%s994_s5 + $0x20] sm:$0xff]  ;;  %s824_s20 = smov [#allocation4]  }
  0x1b   : > { %v718_v19 = vpack.c.bf16 %v466_v18, %v465_v17  ;;  %v649_v24 = vld [vmem:[%s993_s4] ss:$0 sm:$0xff]  ;;  %s588_s21 = sshll.u32 %s824_s20, 4  ;;  %s589_s21 = int_to_ptr.vmem [resolvable:$true] %s588_s21 }
  0x1c   : > { %716 = vmatpush3.bf16.msra.mxu1 %v715_v16  ;;  %v650_v28 = vld [vmem:[%s995_s6] ss:$0 sm:$0xff]  ;;  %s752_s22 = scalar_lea.vmem %s589_s21, 32  ;;  %p759_p9 = scmp.lt.s32.totalorder %s589_s21, %s589_s21 }
  0x1d   : > { %709 = vmatpush3.bf16.msra.mxu0 %v708_v8  ;;  %717 = vmatprep.subr.bf16.mxu1 %v820_v4  ;;  %p753_p6 = scmp.ne.s32.totalorder %s589_s21, %s752_s22  ;;  %p760_p10 = scmp.lt.s32.totalorder %s752_s22, %s752_s22 }
  0x1e   : > { %710 = vmatprep.subr.bf16.mxu0 %v820_v4 }
  0x1f   : > { %p754_p7 = pnand %p753_p6, %p728_p5  ;;  %p761_p11 = por %p760_p10, %p759_p9 }
  0x20   : > { %682 = vmatmul.mubr.msk.f32.vlgmr.msra.gmra.mrb[0].mxu0 %vm303_vm3, %v296_v11  ;;  %719 = vmatpush3.bf16.msra.mxu1 %v718_v19 }
  0x21   : > { %713 = vmatpush3.bf16.msk.msra.mxu0 %vm712_vm5, %v711_v12  ;;  %688 = vmatprep.mubr.msk.f32.mxu0 %vm821_vm1, %v822_v7  ;;  %p755_p8 = pneg %p754_p7 }
  0x22   : > { %699 = vmatprep.subr.mxu1 %v822_v7 }
  0x23   : > { %p762_p12 = pnand %p761_p11, %p755_p8 }
  0x24   : > { %689 = vmatmul.mubr.msk.f32.vlgmr.msra.gmra.mrb[2].mxu0 %vm377_vm6, %v295_v13  ;;  %700 = vmatpush3.msra.mxu1 %v467_v20 }
  0xf3   : > { %v373_v21 = vpop.f32.mrb[0].mxu0 }
  0xf4   : > { %v683_v22 = vpop.f32.mrb[1].mxu0 }
  0xf7   : > { %v451_v23 = vpop.f32.mrb[2].mxu0 }
  0xf8   : > { %v452_v25 = vadd.f32 %v451_v23, %v373_v21  ;;  %v690_v26 = vpop.f32.mrb[3].mxu0 }
  0xfa   : > { %v462_v27 = vadd.f32 %v649_v24, %v452_v25 }
  0xfc   : > { %702 = vmatmul.mubr.msk.f32.vlgmr.msra.gmra.mrb[0].mxu1 %vm475_vm7, %v462_v27  ;;  %567 = vst.msk [vmem:[#allocation4] sm:$0x3] %vm566_vm8, %v462_v27 }
 0x1cf   : > { %v545_v29 = vpop.f32.mrb[0].mxu1 }
 0x1d0   : > { %v546_v30 = vadd.f32 %v650_v28, %v545_v29  ;;  %v703_v31 = vpop.f32.mrb[1].mxu1 }
 0x1d2   : > { %v550_v32 = vsel %vm549_vm9, %v546_v30, -inf }
 0x1d3   : > { %551 = vmax.xlane.f32.xlu0 %v550_v32 }
 0x260   : > { %v552_v33 = vpop.xlane.xlu0 %551 }
 0x261   : > { %v553_v34 = vsub.f32 %v546_v30, %v552_v33 }
 0x263   : > { %v554_v35 = vmul.f32 1.442695, %v553_v34 }
 0x265   : > { %748 = vpow2.f32 %v554_v35 }
 0x26f   : > { %v749_v36 = vpop.eup %748 }
 0x270   : > { %v556_v37 = vsel %vm549_vm9, %v749_v36, 0.0 }
 0x271   : > { %557 = vadd.xlane.f32.xlu0 %v556_v37 }
 0x272   : > { %765 = shalt.err (!%p762_p12)
}
 0x273   : > { %s766_s25 = scalar_lea.hbm %s997_s8, 32 }
 0x274   : > { %p767_p13 = scmp.ne.s32.totalorder %s997_s8, %s766_s25  ;;  %p772_p2 = scmp.lt.u32.totalorder %s766_s25, %s997_s8 }
 0x276   : > { %p768_p0 = pnand %p767_p13, %p728_p5 }
 0x278   : > { %p769_p1 = pneg %p768_p0 }
 0x27a   : > { %p774_p3 = pnand %p772_p2, %p769_p1 }
 0x27c   : > { %777 = shalt.err (!%p774_p3)
}
 0x27d   : > { %723 = dma.vmem_to_hbm [thread:$0]  (%p728_p5), %s589_s21, 32, %s997_s8, [#allocation5]  }
 0x27e   : > { %s652_s13 = sshll.u32 %s879_s28, 1  ;;  %s825_s14 = smov [#allocation2]  }
 0x27f   : > { %s574_s11 = sshll.u32 %s825_s14, 4  ;;  %s564_s15 = scalar_lea.vmem [#allocation2], %s652_s13  ;;  %s575_s11 = int_to_ptr.vmem [resolvable:$true] %s574_s11 }
 0x280   : > { %s778_s16 = scalar_lea.vmem %s575_s11, 256  ;;  %p785_p8 = scmp.lt.s32.totalorder %s575_s11, %s575_s11 }
 0x281   : > { %p779_p4 = scmp.ne.s32.totalorder %s575_s11, %s778_s16  ;;  %p786_p9 = scmp.lt.s32.totalorder %s778_s16, %s778_s16 }
 0x283   : > { %p780_p6 = pnand %p779_p4, %p728_p5  ;;  %p787_p10 = por %p786_p9, %p785_p8 }
 0x285   : > { %p781_p7 = pneg %p780_p6 }
 0x287   : > { %p788_p11 = pnand %p787_p10, %p781_p7 }
 0x2fe   : > { %v558_v38 = vpop.xlane.xlu0 %557 }
 0x2ff   : > { %750 = vlog2.f32 %v558_v38 }
 0x309   : > { %v751_v39 = vpop.eup %750 }
 0x30a   : > { %v560_v40 = vmul.f32 0.6931472, %v751_v39 }
 0x30c   : > { %v561_v41 = vadd.f32 %v560_v40, %v552_v33 }
 0x30e   : > { %v562_v42 = vsub.f32 %v546_v30, %v561_v41 }
 0x310   : > { %565 = vst.msk [vmem:[%s564_s15] sm:$0x3] %vm549_vm9, %v562_v42 }
 0x311   : > { %791 = shalt.err (!%p788_p11)
}
 0x312   : > { %s792_s19 = scalar_lea.hbm %s996_s7, 256 }
 0x313   : > { %p793_p12 = scmp.ne.s32.totalorder %s996_s7, %s792_s19  ;;  %p798_p1 = scmp.lt.u32.totalorder %s792_s19, %s996_s7 }
 0x315   : > { %p794_p13 = pnand %p793_p12, %p728_p5 }
 0x317   : > { %p795_p0 = pneg %p794_p13 }
 0x319   : > { %p800_p2 = pnand %p798_p1, %p795_p0 }
 0x31b   : > { %803 = shalt.err (!%p800_p2)
}
 0x31c   : > { %s826_s24 = smov 32   ;;  %s827_s25 = smov 2  }
 0x31d   : > { %721 = dma.vmem_to_hbm [thread:$0]  (%p728_p5), %s575_s11, 256, %s996_s7, [#allocation3], %s826_s24, %s826_s24, %s827_s25  }
 0x31e   : > { %809 = dma.done.wait (%p728_p5), [#allocation3], 256  }
 0x31f   : > { %811 = vsyncadd (%p728_p5), [#allocation3], 4294967040 }
 0x320   : > { %813 = dma.done.wait (%p728_p5), [#allocation5], 32  }
 0x321   : > { %815 = vsyncadd (%p728_p5), [#allocation5], 4294967264 }
 0x322 PF: > { %s21_s27 = sadd.s32 1, %s818_s27  }
 0x323   : > { %p18_p3 = scmp.ge.s32.totalorder %s21_s27, 10  }
 0x325   :  { %20 = sbr.rel (!%p18_p3) target bundleno = 2 (0x2), region = 88 }
 0x32c   :  { %605 = vsyncpa [#allocation3], 1 }
 0x32d   :  { %607 = vsyncpa [#allocation3 + $0x1], 1 }
 0x32e   :  { %608 = vsyncpa [#allocation5], 1 }

</bundles_post_ra>
